<compile_context>
chip_gen: v6e
topology: v6e:2x2x1
jax: 0.10.0
libtpu: 0.0.40
codegen_flags: <defaults>
</compile_context>

<pallas_src>
import functools

import jax
import jax.numpy as jnp
from jax import lax
from jax.experimental import pallas as pl
from jax.experimental.pallas import tpu as pltpu


def _default_vmem_limit():
    """Per-generation scoped-VMEM budget (3/4 of physical capacity, capped at 100 MiB)."""
    cap = 64 * 1024 * 1024
    try:
        info = pltpu.get_tpu_info()
        cap = int(getattr(info, "vmem_capacity_bytes", cap))
    except Exception:
        pass
    return int(max(32 * 1024 * 1024, min(cap * 3 // 4, 100 * 1024 * 1024)))


_VMEM_LIMIT = _default_vmem_limit()


# ---------------------------------------------------------------------------
# Pallas kernel 1: fused 3x3 offset convolution (single K=9C MXU matmul)
# ---------------------------------------------------------------------------
def _offset_conv_kernel(x_ref, w_ref, o_ref, *, C, Q, Wp):
    # x_ref: (1, C, L)        flattened padded image (L = (H+2)*(W+2)+2), lanes = spatial
    # w_ref: (co_pad, 9*C)    fused tap weights, rows = out-channels (8-aligned)
    # o_ref: (1, co_pad, Q)   flat output incl. 2 dead cols per row (Q = H*(W+2))
    #
    # Tap (ki, kj) of the 3x3 cross-correlation is a pure flat shift of ki*Wp+kj on the
    # flattened padded image, so every tap is a contiguous lane slice: stack the 9 taps
    # along the contraction dim and issue ONE K=9C matmul (no per-tap accumulator).
    taps = jnp.concatenate(
        [x_ref[0, :, ki * Wp + kj: ki * Wp + kj + Q]
         for ki in range(3) for kj in range(3)],
        axis=0)                                                       # (9C, Q)
    o_ref[0] = jnp.dot(w_ref[...], taps, preferred_element_type=jnp.float32)


def offset_conv_pallas(x_nchw, w_fused):
    """nn.Conv2d(c, co, 3, padding=1, bias=False) (cross-correlation).

    Returns the conv output channel-major and spatially flattened: (b, co, h*w).
    """
    b, c, h, w = x_nchw.shape
    co = w_fused.shape[0]
    co_pad = -(-co // 8) * 8              # sublane-align out channels only (no 128 pad)
    hp, wp = h + 2, w + 2
    Q = h * wp                            # per-image flat output length (2 dead cols/row)
    L = hp * wp + 2                       # flat input + slack so the (2,2) tap slice fits

    x_flat = jnp.pad(x_nchw, ((0, 0), (0, 0), (1, 1), (1, 1)))
    x_flat = jnp.pad(x_flat.reshape(b, c, hp * wp), ((0, 0), (0, 0), (0, 2)))
    # rows = out-channel, cols ordered (ki, kj, c_in) to match the in-kernel tap stack
    w_k = jnp.transpose(w_fused, (0, 2, 3, 1)).reshape(co, 9 * c)
    w_k = jnp.pad(w_k, ((0, co_pad - co), (0, 0)))

    # TODO(synk): for very large images (or b < #TensorCores on v7x) add a halo'd
    # H-tile grid axis instead of one whole image per grid step.
    out = pl.pallas_call(
        functools.partial(_offset_conv_kernel, C=c, Q=Q, Wp=wp),
        out_shape=jax.ShapeDtypeStruct((b, co_pad, Q), jnp.float32),
        grid=(b,),
        in_specs=[pl.BlockSpec((1, c, L), lambda i: (i, 0, 0)),
                  pl.BlockSpec((co_pad, 9 * c), lambda i: (0, 0))],
        out_specs=pl.BlockSpec((1, co_pad, Q), lambda i: (i, 0, 0)),
        compiler_params=pltpu.CompilerParams(
            dimension_semantics=("parallel",),
            vmem_limit_bytes=_VMEM_LIMIT),
    )(x_flat, w_k)
    # Strip the out-channel padding and the 2 dead columns per row.
    out = out[:, :co, :].reshape(b, co, h, wp)[:, :, :, :w]
    return out.reshape(b, co, h * w)


# ---------------------------------------------------------------------------
# Pallas kernel 2: deformable bilinear sampling (tent weights + MXU matmul)
# ---------------------------------------------------------------------------
def _sample_kernel(x_ref, cy_ref, cx_ref, o_ref, *, H, W):
    # x_ref:  (NB, H, W)   source planes (shared by both branches)
    # cy_ref: (NB, TP)     clamped row coords for this query tile
    # cx_ref: (NB, TP)     clamped col coords for this query tile
    # o_ref:  (NB, TP)
    nb, tp = o_ref.shape
    cy = cy_ref[...]
    cx = cx_ref[...]

    # Tent-function bilinear weights (exact for coords clamped to the image):
    #   rx[w, p] = max(0, 1 - |w - cx[p]|),  ry[h, p] = max(0, 1 - |h - cy[p]|)
    col = lax.broadcasted_iota(jnp.int32, (nb, W, tp), 1).astype(jnp.float32)
    rx = jnp.maximum(1.0 - jnp.abs(col - cx[:, None, :]), 0.0)        # (NB, W, TP)

    # Horizontal gather + lerp on the MXU: G[n,h,p] = sum_w X[n,h,w] * Rx[n,w,p]
    g = jnp.einsum("nhw,nwp->nhp", x_ref[...], rx,
                   preferred_element_type=jnp.float32)                # (NB, H, TP)

    row = lax.broadcasted_iota(jnp.int32, (nb, H, tp), 1).astype(jnp.float32)
    ry = jnp.maximum(1.0 - jnp.abs(row - cy[:, None, :]), 0.0)        # (NB, H, TP)

    # Vertical lerp = multiply + XLU reduce over H.
    o_ref[...] = jnp.sum(ry * g, axis=1)


def _pick_sampler_tiles(n_planes, H, W, vmem_limit):
    """Choose (NB planes/step, TP queries/step) from the per-generation VMEM budget."""
    P = H * W
    NB = 16 if (n_planes >= 16 and vmem_limit >= 64 * 1024 * 1024) else 8
    budget = vmem_limit // 3            # leave headroom for double-buffered blocks

    def step_bytes(tp):
        # rx + ry + g intermediates plus the x / coord / out blocks, f32.
        return 4 * NB * (tp * (2 * H + W + 8) + 2 * H * W)

    if step_bytes(P) <= budget:
        return NB, P
    for cand in (4096, 2048, 1024, 512, 256):
        if cand < P and P % cand == 0 and step_bytes(cand) <= budget:
            return NB, cand
    # TODO(synk): no 128-aligned divisor of P fits the budget; fall back to full P.
    return NB, P


def bilinear_sample_pallas(x_planes, cys, cxs):
    """Bilinear-sample shared planes at per-branch clamped coords.

    x_planes: (n, h, w); cys/cxs: lists of per-branch (n, h*w) clamped coords.
    Returns a list of per-branch (n, h*w) sampled values.  The planes are passed once
    and shared by every branch through a wrapping index_map (no duplicated x in HBM).
    """
    n, h, w = x_planes.shape
    P = h * w
    nbr = len(cys)
    NB, TP = _pick_sampler_tiles(n, h, w, _VMEM_LIMIT)

    n_pad = -(-n // NB) * NB
    if n_pad != n:
        pad = n_pad - n
        x_planes = jnp.pad(x_planes, ((0, pad), (0, 0), (0, 0)))
        cys = [jnp.pad(cc, ((0, pad), (0, 0))) for cc in cys]
        cxs = [jnp.pad(cc, ((0, pad), (0, 0))) for cc in cxs]
    cy_all = jnp.concatenate(cys, axis=0)           # (nbr * n_pad, P)
    cx_all = jnp.concatenate(cxs, axis=0)

    n_blk = n_pad // NB
    if n_blk == 1:
        x_map = lambda i, q: (0, 0, 0)
    else:
        x_map = lambda i, q: (i % n_blk, 0, 0)      # branches wrap onto the same planes

    out = pl.pallas_call(
        functools.partial(_sample_kernel, H=h, W=w),
        out_shape=jax.ShapeDtypeStruct((nbr * n_pad, P), jnp.float32),
        grid=(nbr * n_blk, P // TP),
        in_specs=[pl.BlockSpec((NB, h, w), x_map),
                  pl.BlockSpec((NB, TP), lambda i, q: (i, q)),
                  pl.BlockSpec((NB, TP), lambda i, q: (i, q))],
        out_specs=pl.BlockSpec((NB, TP), lambda i, q: (i, q)),
        compiler_params=pltpu.CompilerParams(
            dimension_semantics=("parallel", "parallel"),
            vmem_limit_bytes=_VMEM_LIMIT),
    )(x_planes, cy_all, cx_all)
    return [out[k * n_pad: k * n_pad + n] for k in range(nbr)]


# ---------------------------------------------------------------------------
# ConvOffset2D_multi forward
# ---------------------------------------------------------------------------
def conv_offset_2d_multi(x, w1, w2):
    b, c, h, wdt = x.shape
    P = h * wdt

    # Both branches' offset convs take x as input -> fuse into one Pallas conv.
    w_fused = jnp.concatenate([w1, w2], axis=0)            # (4c, c, 3, 3)
    off_all = offset_conv_pallas(x, w_fused)               # (b, 4c, h*w) channel-major

    # _to_bc_h_w_2: raw contiguous view (b, 2c, h, w) -> (b*c, h*w, 2)
    off1 = off_all[:, :2 * c, :].reshape(b * c, P, 2)
    off2 = off_all[:, 2 * c:, :].reshape(b * c, P, 2)

    x_planes = x.reshape(b * c, h, wdt)

    # TODO(synk): this pointwise coordinate math could be fused into the sampler
    # prologue; the clamped coords must be materialized as module outputs anyway, so
    # only the sampler's re-read of cy/cx would be saved.
    gy, gx = jnp.meshgrid(jnp.arange(h), jnp.arange(wdt), indexing="ij")
    base = jnp.stack([gy.reshape(-1), gx.reshape(-1)], axis=-1).astype(jnp.float32)
    base = base[None]                                      # (1, P, 2), broadcast over b*c

    coords1 = off1 + base
    cy1 = jnp.clip(coords1[..., 0], 0.0, float(h - 1))
    cx1 = jnp.clip(coords1[..., 1], 0.0, float(wdt - 1))

    # Branch 2 bases off branch 1's clamped coords (it does NOT need mv1), so both
    # branches' sampling runs in a single pallas_call over shared planes.
    coords2 = off2 + jnp.stack([cy1, cx1], axis=-1)
    cy2 = jnp.clip(coords2[..., 0], 0.0, float(h - 1))
    cx2 = jnp.clip(coords2[..., 1], 0.0, float(wdt - 1))

    mv1, mv2 = bilinear_sample_pallas(x_planes, [cy1, cy2], [cx1, cx2])
    mv1 = mv1.reshape(b, c, h, wdt)
    mv2 = mv2.reshape(b, c, h, wdt)

    # torch.stack([x.unsq(4), mv1.unsq(4), mv2.unsq(4)], dim=4).squeeze()
    # (squeeze only removes the trailing singleton here since b,c,h,w > 1)
    mapped_vals = jnp.stack([x, mv1, mv2], axis=-1)        # (b, c, h, w, 3)

    c1 = jnp.stack([cy1, cx1], axis=-1)                    # (b*c, h*w, 2)
    c2 = jnp.stack([cy2, cx2], axis=-1)
    coords = jnp.stack([jnp.zeros_like(c1), c1, c2], axis=3)      # (b*c, h*w, 2, 3)
    coords = coords.reshape(b, c, h, wdt, 2, 3)
    return mapped_vals, coords


# ---------------------------------------------------------------------------
# Pure-JAX reference (lax.conv + take_along_axis gather) for validation
# ---------------------------------------------------------------------------
def _reference_forward(x, w1, w2):
    def conv(xx, ww):
        return lax.conv_general_dilated(xx, ww, (1, 1), ((1, 1), (1, 1)),
                                        dimension_numbers=("NCHW", "OIHW", "NCHW"))

    def single(xx, ww, prev):
        b, c, h, wdt = xx.shape
        off = conv(xx, ww).reshape(b * c, h * wdt, 2)
        xf = xx.reshape(b * c, h * wdt)
        if prev is None:
            gy, gx = jnp.meshgrid(jnp.arange(h), jnp.arange(wdt), indexing="ij")
            base = jnp.stack([gy.reshape(-1), gx.reshape(-1)], -1).astype(jnp.float32)
            base = jnp.broadcast_to(base[None], (b * c, h * wdt, 2))
        else:
            base = prev
        coords = off + base
        cy = jnp.clip(coords[..., 0], 0.0, h - 1.0)
        cx = jnp.clip(coords[..., 1], 0.0, wdt - 1.0)
        y0, y1 = jnp.floor(cy), jnp.ceil(cy)
        x0, x1 = jnp.floor(cx), jnp.ceil(cx)
        fy, fx = cy - y0, cx - x0

        def g(iy, ix):
            idx = (iy * wdt + ix).astype(jnp.int32)
            return jnp.take_along_axis(xf, idx, axis=1)

        v_lt, v_rb, v_lb, v_rt = g(y0, x0), g(y1, x1), g(y0, x1), g(y1, x0)
        vt = v_lt + (v_rt - v_lt) * fy
        vb = v_lb + (v_rb - v_lb) * fy
        m = vt + (vb - vt) * fx
        return m.reshape(b, c, h, wdt), jnp.stack([cy, cx], -1)

    b, c, h, wdt = x.shape
    mv1, c1 = single(x, w1, None)
    mv2, c2 = single(x, w2, c1)
    mv = jnp.stack([x, mv1, mv2], -1)
    co = jnp.stack([jnp.zeros_like(c1), c1, c2], axis=3).reshape(b, c, h, wdt, 2, 3)
    return mv, co


if __name__ == "__main__":
    key = jax.random.PRNGKey(0)
    kx, k1, k2, k3 = jax.random.split(key, 4)
    b, c, h, w = 2, 4, 16, 16
    x = jax.random.normal(kx, (b, c, h, w), jnp.float32)

    std = 0.01  # init_normal_stddev
    w1 = std * jax.random.normal(k1, (2 * c, c, 3, 3), jnp.float32)   # conv_1 offset weights
    w2 = std * jax.random.normal(k2, (2 * c, c, 3, 3), jnp.float32)   # conv_2 offset weights
    _w3 = std * jax.random.normal(k3, (2 * c, c, 3, 3), jnp.float32)  # conv_3 exists but unused in forward

    mapped_vals, coords = jax.jit(conv_offset_2d_multi)(x, w1, w2)
    jax.block_until_ready((mapped_vals, coords))

    assert mapped_vals.shape == (b, c, h, w, 3)
    assert coords.shape == (b, c, h, w, 2, 3)

    ref_mv, ref_co = _reference_forward(x, w1, w2)
    assert jnp.allclose(mapped_vals, ref_mv, atol=1e-4, rtol=1e-4)
    assert jnp.allclose(coords, ref_co, atol=1e-4, rtol=1e-4)

    print("KERNEL_OK")
</pallas_src>

<mosaic_0001>
module attributes {stable_mosaic.version = 11 : i64} {
  func.func @_offset_conv_kernel(%arg0: i32, %arg1: memref<1x4x326xf32, #tpu.memory_space<vmem>>, %arg2: memref<16x36xf32, #tpu.memory_space<vmem>>, %arg3: memref<1x16x288xf32, #tpu.memory_space<vmem>>) attributes {dimension_semantics = [#tpu.dimension_semantics<parallel>], iteration_bounds = array<i64: 2>, scalar_prefetch = 0 : i64, scratch_operands = 0 : i64, tpu.core_type = #tpu.core_type<tc>, window_params = [{transform_indices = @transform_0, window_bounds = array<i64: 1, 4, 326>}, {pipeline_mode = #tpu.pipeline_mode<synchronous>, transform_indices = @transform_1, window_bounds = array<i64: 16, 36>}, {transform_indices = @transform_2, window_bounds = array<i64: 1, 16, 288>}]} {
    %c0 = arith.constant 0 : index
    %c0_0 = arith.constant 0 : index
    %c0_1 = arith.constant 0 : index
    %0 = vector.load %arg1[%c0, %c0_0, %c0_1] : memref<1x4x326xf32, #tpu.memory_space<vmem>>, vector<1x4x288xf32>
    %1 = vector.shape_cast %0 : vector<1x4x288xf32> to vector<4x288xf32>
    %c0_2 = arith.constant 0 : index
    %c0_3 = arith.constant 0 : index
    %c1 = arith.constant 1 : index
    %2 = vector.load %arg1[%c0_2, %c0_3, %c1] : memref<1x4x326xf32, #tpu.memory_space<vmem>>, vector<1x4x288xf32>
    %3 = vector.shape_cast %2 : vector<1x4x288xf32> to vector<4x288xf32>
    %c0_4 = arith.constant 0 : index
    %c0_5 = arith.constant 0 : index
    %c2 = arith.constant 2 : index
    %4 = vector.load %arg1[%c0_4, %c0_5, %c2] : memref<1x4x326xf32, #tpu.memory_space<vmem>>, vector<1x4x288xf32>
    %5 = vector.shape_cast %4 : vector<1x4x288xf32> to vector<4x288xf32>
    %c0_6 = arith.constant 0 : index
    %c0_7 = arith.constant 0 : index
    %c18 = arith.constant 18 : index
    %6 = vector.load %arg1[%c0_6, %c0_7, %c18] : memref<1x4x326xf32, #tpu.memory_space<vmem>>, vector<1x4x288xf32>
    %7 = vector.shape_cast %6 : vector<1x4x288xf32> to vector<4x288xf32>
    %c0_8 = arith.constant 0 : index
    %c0_9 = arith.constant 0 : index
    %c19 = arith.constant 19 : index
    %8 = vector.load %arg1[%c0_8, %c0_9, %c19] : memref<1x4x326xf32, #tpu.memory_space<vmem>>, vector<1x4x288xf32>
    %9 = vector.shape_cast %8 : vector<1x4x288xf32> to vector<4x288xf32>
    %c0_10 = arith.constant 0 : index
    %c0_11 = arith.constant 0 : index
    %c20 = arith.constant 20 : index
    %10 = vector.load %arg1[%c0_10, %c0_11, %c20] : memref<1x4x326xf32, #tpu.memory_space<vmem>>, vector<1x4x288xf32>
    %11 = vector.shape_cast %10 : vector<1x4x288xf32> to vector<4x288xf32>
    %c0_12 = arith.constant 0 : index
    %c0_13 = arith.constant 0 : index
    %c36 = arith.constant 36 : index
    %12 = vector.load %arg1[%c0_12, %c0_13, %c36] : memref<1x4x326xf32, #tpu.memory_space<vmem>>, vector<1x4x288xf32>
    %13 = vector.shape_cast %12 : vector<1x4x288xf32> to vector<4x288xf32>
    %c0_14 = arith.constant 0 : index
    %c0_15 = arith.constant 0 : index
    %c37 = arith.constant 37 : index
    %14 = vector.load %arg1[%c0_14, %c0_15, %c37] : memref<1x4x326xf32, #tpu.memory_space<vmem>>, vector<1x4x288xf32>
    %15 = vector.shape_cast %14 : vector<1x4x288xf32> to vector<4x288xf32>
    %c0_16 = arith.constant 0 : index
    %c0_17 = arith.constant 0 : index
    %c38 = arith.constant 38 : index
    %16 = vector.load %arg1[%c0_16, %c0_17, %c38] : memref<1x4x326xf32, #tpu.memory_space<vmem>>, vector<1x4x288xf32>
    %17 = vector.shape_cast %16 : vector<1x4x288xf32> to vector<4x288xf32>
    %18 = tpu.concatenate %1, %3, %5, %7, %9, %11, %13, %15, %17 in 0 : vector<4x288xf32>, vector<4x288xf32>, vector<4x288xf32>, vector<4x288xf32>, vector<4x288xf32>, vector<4x288xf32>, vector<4x288xf32>, vector<4x288xf32>, vector<4x288xf32> -> vector<36x288xf32>
    %c0_18 = arith.constant 0 : index
    %c0_19 = arith.constant 0 : index
    %19 = vector.load %arg2[%c0_18, %c0_19] : memref<16x36xf32, #tpu.memory_space<vmem>>, vector<16x36xf32>
    %cst = arith.constant dense<0.000000e+00> : vector<16x288xf32>
    %20 = tpu.matmul %19, %18, %cst {dimension_numbers = #tpu.dot_dimension_numbers<[1], [0], [0], [1], [0, 0, 1, 1], [], []>} : vector<16x36xf32>, vector<36x288xf32>, vector<16x288xf32> -> vector<16x288xf32>
    %c0_20 = arith.constant 0 : index
    %c0_21 = arith.constant 0 : index
    %c0_22 = arith.constant 0 : index
    %21 = vector.load %arg3[%c0_20, %c0_21, %c0_22] : memref<1x16x288xf32, #tpu.memory_space<vmem>>, vector<1x16x288xf32>
    %22 = vector.shape_cast %21 : vector<1x16x288xf32> to vector<16x288xf32>
    %23 = vector.shape_cast %20 : vector<16x288xf32> to vector<1x16x288xf32>
    tpu.vector_store %arg3[%c0_20, %c0_21, %c0_22], %23 {strides = array<i32>} : memref<1x16x288xf32, #tpu.memory_space<vmem>>, vector<1x16x288xf32>,
    return
  }
  func.func @transform_0(%arg0: i32) -> (i32, i32, i32) {
    %c0_i32 = arith.constant 0 : i32
    %c0_i32_0 = arith.constant 0 : i32
    %c0_i32_1 = arith.constant 0 : i32
    return %arg0, %c0_i32, %c0_i32_0 : i32, i32, i32
  }
  func.func @transform_1(%arg0: i32) -> (i32, i32) {
    %c0_i32 = arith.constant 0 : i32
    %c0_i32_0 = arith.constant 0 : i32
    %c0_i32_1 = arith.constant 0 : i32
    return %c0_i32, %c0_i32_0 : i32, i32
  }
  func.func @transform_2(%arg0: i32) -> (i32, i32, i32) {
    %c0_i32 = arith.constant 0 : i32
    %c0_i32_0 = arith.constant 0 : i32
    %c0_i32_1 = arith.constant 0 : i32
    return %arg0, %c0_i32, %c0_i32_0 : i32, i32, i32
  }
}

module attributes {stable_mosaic.version = 11 : i64} {
  func.func @_sample_kernel(%arg0: i32, %arg1: i32, %arg2: memref<8x16x16xf32, #tpu.memory_space<vmem>>, %arg3: memref<8x256xf32, #tpu.memory_space<vmem>>, %arg4: memref<8x256xf32, #tpu.memory_space<vmem>>, %arg5: memref<8x256xf32, #tpu.memory_space<vmem>>) attributes {dimension_semantics = [#tpu.dimension_semantics<parallel>, #tpu.dimension_semantics<parallel>], iteration_bounds = array<i64: 2, 1>, scalar_prefetch = 0 : i64, scratch_operands = 0 : i64, tpu.core_type = #tpu.core_type<tc>, window_params = [{pipeline_mode = #tpu.pipeline_mode<synchronous>, transform_indices = @transform_0, window_bounds = array<i64: 8, 16, 16>}, {transform_indices = @transform_1, window_bounds = array<i64: 8, 256>}, {transform_indices = @transform_2, window_bounds = array<i64: 8, 256>}, {transform_indices = @transform_3, window_bounds = array<i64: 8, 256>}]} {
    %c0 = arith.constant 0 : index
    %c0_0 = arith.constant 0 : index
    %0 = vector.load %arg3[%c0, %c0_0] : memref<8x256xf32, #tpu.memory_space<vmem>>, vector<8x256xf32>
    %c0_1 = arith.constant 0 : index
    %c0_2 = arith.constant 0 : index
    %1 = vector.load %arg4[%c0_1, %c0_2] : memref<8x256xf32, #tpu.memory_space<vmem>>, vector<8x256xf32>
    %2 = tpu.iota {dimensions = array<i32: 1>} : vector<8x16x256xi32>
    %3 = arith.sitofp %2 : vector<8x16x256xi32> to vector<8x16x256xf32>
    %4 = vector.shape_cast %1 : vector<8x256xf32> to vector<8x1x256xf32>
    %5 = vector.broadcast %4 : vector<8x1x256xf32> to vector<8x16x256xf32>
    %6 = arith.subf %3, %5 : vector<8x16x256xf32>
    %7 = math.absf %6 : vector<8x16x256xf32>
    %cst = arith.constant 1.000000e+00 : f32
    %8 = vector.broadcast %cst : f32 to vector<8x16x256xf32>
    %9 = arith.subf %8, %7 : vector<8x16x256xf32>
    %cst_3 = arith.constant 0.000000e+00 : f32
    %10 = vector.broadcast %cst_3 : f32 to vector<8x16x256xf32>
    %11 = arith.maximumf %9, %10 : vector<8x16x256xf32>
    %c0_4 = arith.constant 0 : index
    %c0_5 = arith.constant 0 : index
    %c0_6 = arith.constant 0 : index
    %12 = vector.load %arg2[%c0_4, %c0_5, %c0_6] : memref<8x16x16xf32, #tpu.memory_space<vmem>>, vector<8x16x16xf32>
    "tpu.trace_start"() <{level = 10 : i32, message = "nhw,nwp->nhp"}> : () -> ()
    %cst_7 = arith.constant dense<0.000000e+00> : vector<8x16x256xf32>
    %13 = tpu.matmul %12, %11, %cst_7 {dimension_numbers = #tpu.dot_dimension_numbers<[2], [1], [1], [2], [0, 0, 0, 1, 1, 2], [0], [0]>} : vector<8x16x16xf32>, vector<8x16x256xf32>, vector<8x16x256xf32> -> vector<8x16x256xf32>
    "tpu.trace_stop"() : () -> ()
    %14 = tpu.iota {dimensions = array<i32: 1>} : vector<8x16x256xi32>
    %15 = arith.sitofp %14 : vector<8x16x256xi32> to vector<8x16x256xf32>
    %16 = vector.shape_cast %0 : vector<8x256xf32> to vector<8x1x256xf32>
    %17 = vector.broadcast %16 : vector<8x1x256xf32> to vector<8x16x256xf32>
    %18 = arith.subf %15, %17 : vector<8x16x256xf32>
    %19 = math.absf %18 : vector<8x16x256xf32>
    %cst_8 = arith.constant 1.000000e+00 : f32
    %20 = vector.broadcast %cst_8 : f32 to vector<8x16x256xf32>
    %21 = arith.subf %20, %19 : vector<8x16x256xf32>
    %cst_9 = arith.constant 0.000000e+00 : f32
    %22 = vector.broadcast %cst_9 : f32 to vector<8x16x256xf32>
    %23 = arith.maximumf %21, %22 : vector<8x16x256xf32>
    %24 = arith.mulf %23, %13 : vector<8x16x256xf32>
    %cst_10 = arith.constant dense<0.000000e+00> : vector<8x256xf32>
    %25 = vector.multi_reduction <add>, %24, %cst_10 [1] : vector<8x16x256xf32> to vector<8x256xf32>
    %c0_11 = arith.constant 0 : index
    %c0_12 = arith.constant 0 : index
    %26 = vector.load %arg5[%c0_11, %c0_12] : memref<8x256xf32, #tpu.memory_space<vmem>>, vector<8x256xf32>
    tpu.vector_store %arg5[%c0_11, %c0_12], %25 {strides = array<i32>} : memref<8x256xf32, #tpu.memory_space<vmem>>, vector<8x256xf32>,
    return
  }
  func.func @transform_0(%arg0: i32, %arg1: i32) -> (i32, i32, i32) {
    %c0_i32 = arith.constant 0 : i32
    %c0_i32_0 = arith.constant 0 : i32
    %c0_i32_1 = arith.constant 0 : i32
    %c0_i32_2 = arith.constant 0 : i32
    return %c0_i32, %c0_i32_0, %c0_i32_1 : i32, i32, i32
  }
  func.func @transform_1(%arg0: i32, %arg1: i32) -> (i32, i32) {
    %c0_i32 = arith.constant 0 : i32
    return %arg0, %arg1 : i32, i32
  }
  func.func @transform_2(%arg0: i32, %arg1: i32) -> (i32, i32) {
    %c0_i32 = arith.constant 0 : i32
    return %arg0, %arg1 : i32, i32
  }
  func.func @transform_3(%arg0: i32, %arg1: i32) -> (i32, i32) {
    %c0_i32 = arith.constant 0 : i32
    return %arg0, %arg1 : i32, i32
  }
}

</mosaic_0001>

<bundles_post_ra>
// kernel: conv_offset_2d_multi.2
= control target key start
LH: loop header
LB: loop body
LE: loop exit
PB: predicated region body
PF: predicated region fallthrough
CT: control target
= control target key end

     0   :  { %s577_s9 = smov 0   ;;  %s663_s0 = inlined_call_operand.vmem [shape: f32[2,4,326], index: 0, kind: input, shape index: {}]   ;;  %s664_s1 = inlined_call_operand.vmem [shape: f32[16,36], index: 1, kind: input, shape index: {}]   ;;  %s665_s2 = inlined_call_operand.vmem [shape: f32[2,16,288], index: 2, kind: output, shape index: {}]  }
   0x1 LB: > { %s487_s10 = sadd.s32 4294967295, %s551_s9   ;;  %p491_p0 = scmp.ge.s32.totalorder %s551_s9, 1  ;;  %s551_s9 = sphi %s577_s9, %s12_s9  }
   0x2   : > { %p112_p1 = scmp.lt.s32.totalorder %s551_s9, 3 }
   0x4   : > { %p113_p2 = pnand %p491_p0, %p112_p1 }
   0x5   : > { %p134_p3 = scmp.lt.s32.totalorder (!%p113_p2), %s487_s10, 1  ;;  %s553_s15 = smov (!%p113_p2), 92  }
   0x6   : > { %116 = sbr.rel (%p113_p2) target bundleno = 379 (0x17b), region = 28  ;;  %s554_s16 = smov (!%p113_p2), 90  }
   0x7   : > { %s555_s17 = smov (!%p113_p2), 91   ;;  %s556_s18 = smov (!%p113_p2), 109  }
   0x8   : > { %s557_s19 = smov (!%p113_p2), 108   ;;  %s558_s20 = smov (!%p113_p2), 126  }
   0x9   : > { %s559_s21 = smov (!%p113_p2), 110   ;;  %s561_s24 = smov (!%p113_p2), 127  }
   0xb   : > { %s667_s10 = smov (!%p134_p3, %s487_s10), 1  ;;  %v560_v5 = vmov 0.0   ;;  %v621_v6 = vld [vmem:[%s664_s1] sm:$0xff]  ;;  %vm260_vm0 = vcmask 293888   ;;  %vm245_vm1 = vcmask 1043456   ;;  %vm242_vm2 = vcmask 736256  }
   0xc   : > { %s523_s11 = smul.u32 12, %s667_s10  ;;  %337 = vmatprep.mubr.f32.mxu0 %v560_v5  ;;  %520 = vmatprep.mubr.msk.f32.mxu1 %vm260_vm0, %v621_v6  ;;  %vm230_vm3 = vcmask 744448   ;;  %vm218_vm4 = vcmask 752640   ;;  %vm194_vm5 = vcmask 891904   ;;  %vm206_vm6 = vcmask 883712   ;;  %v259_v57 = vld [vmem:[%s664_s1 + $0x8] sm:$0xff] }
   0xd   : > { %vm170_vm7 = vcmask 1031168   ;;  %vm182_vm8 = vcmask 900096   ;;  %vm158_vm9 = vcmask 1039360   ;;  %s524_s27 = smul.u32 48, %s667_s10  ;;  %vm427_vm10 = vcmask 261120  }
   0xe   : > { %s138_s14 = scalar_lea.vmem %s663_s0, %s523_s11 }
   0xf   : > { %v591_v0 = vld [vmem:[%s138_s14 + $0x8] sm:$0xf]  ;;  %v593_v1 = vld [vmem:[%s138_s14] sm:$0xff]  ;;  %s143_s30 = scalar_lea.vmem %s665_s2, %s524_s27 }
  0x10   : > { %216 = vrot.lane.b32.xlu1 %v591_v0, %s553_s15  ;;  %240 = vrot.lane.b32.xlu0 %v591_v0, %s554_s16  ;;  %v599_v2 = vcombine.high %v593_v1, %v593_v1  ;;  %v151_v3 = vcombine.low %v591_v0, %v591_v0  ;;  %v150_v4 = vcombine.low %v593_v1, %v593_v1 }
  0x14   : > { %226 = vrot.lane.b32.xlu0 %v593_v1, %s555_s17  ;;  %214 = vrot.lane.b32.xlu1 %v599_v2, %s553_s15 }
  0x18   : > { %228 = vrot.lane.b32.xlu1 %v151_v3, %s555_s17  ;;  %238 = vrot.lane.b32.xlu0 %v599_v2, %s554_s16 }
  0x1c   : > { %212 = vrot.lane.b32.xlu1 %v593_v1, %s553_s15  ;;  %236 = vrot.lane.b32.xlu0 %v593_v1, %s554_s16 }
  0x20   : > { %190 = vrot.lane.b32.xlu1 %v599_v2, %s556_s18  ;;  %224 = vrot.lane.b32.xlu0 %v150_v4, %s555_s17 }
  0x24   : > { %202 = vrot.lane.b32.xlu1 %v593_v1, %s557_s19  ;;  %192 = vrot.lane.b32.xlu0 %v591_v0, %s556_s18 }
  0x28   : > { %188 = vrot.lane.b32.xlu1 %v593_v1, %s556_s18  ;;  %204 = vrot.lane.b32.xlu0 %v151_v3, %s557_s19 }
  0x2c   : > { %166 = vrot.lane.b32.xlu1 %v599_v2, %s558_s20  ;;  %200 = vrot.lane.b32.xlu0 %v150_v4, %s557_s19 }
  0x30   : > { %178 = vrot.lane.b32.xlu1 %v593_v1, %s559_s21  ;;  %168 = vrot.lane.b32.xlu0 %v591_v0, %s558_s20 }
  0x34   : > { %164 = vrot.lane.b32.xlu1 %v593_v1, %s558_s20  ;;  %180 = vrot.lane.b32.xlu0 %v151_v3, %s559_s21 }
  0x38   : > { %154 = vrot.lane.b32.xlu1 %v593_v1, %s561_s24  ;;  %176 = vrot.lane.b32.xlu0 %v150_v4, %s559_s21 }
  0x3c   : > { %152 = vrot.lane.b32.xlu1 %v150_v4, %s561_s24  ;;  %156 = vrot.lane.b32.xlu0 %v151_v3, %s561_s24 }
  0x82   : > { %v217_v7 = vpop.permute.xlu1 %216  ;;  %v241_v8 = vpop.permute.xlu0 %240 }
  0x83   : > { %510 = vmatprep.subr.msk.mxu1 %vm245_vm1, %v241_v8 }
  0x84   : > { %511 = vmatpush3.msk.msra.mxu1 %vm245_vm1, %v241_v8 }
  0x86   : > { %v227_v9 = vpop.permute.xlu0 %226  ;;  %v215_v10 = vpop.permute.xlu1 %214 }
  0x87   : > { %v220_v18 = vsel %vm218_vm4, %v215_v10, %v217_v7 }
  0x8a   : > { %v229_v11 = vpop.permute.xlu1 %228  ;;  %v239_v12 = vpop.permute.xlu0 %238 }
  0x8b   : > { %v244_v13 = vsel %vm242_vm2, %v239_v12, %v241_v8  ;;  %v257_v14 = vsel %vm245_vm1, %v217_v7, %v229_v11  ;;  %v232_v15 = vsel %vm230_vm3, %v227_v9, %v229_v11 }
  0x8c   : > { %494 = vmatprep.subr.msk.mxu0 %vm245_vm1, %v244_v13  ;;  %512 = vmatprep.subr.mxu1 %v257_v14  ;;  %v256_v20 = vsel %vm245_vm1, %v220_v18, %v232_v15 }
  0x8d   : > { %513 = vmatpush3.msra.mxu1 %v257_v14 }
  0x8e   : > { %v213_v16 = vpop.permute.xlu1 %212  ;;  %v237_v17 = vpop.permute.xlu0 %236 }
  0x8f   : > { %v243_v19 = vsel %vm242_vm2, %v237_v17, %v239_v12  ;;  %v219_v23 = vsel %vm218_vm4, %v213_v16, %v215_v10 }
  0x90   : > { %495 = vmatpush1.msk.msra.mxu0 %vm245_vm1, %v243_v19 }
  0x91   : > { %297 = vmatprep.subr.mxu0 %v256_v20 }
  0x92   : > { %v191_v21 = vpop.permute.xlu1 %190  ;;  %v225_v22 = vpop.permute.xlu0 %224 }
  0x93   : > { %v231_v24 = vsel %vm230_vm3, %v225_v22, %v227_v9 }
  0x94   : > { %v255_v25 = vsel %vm245_vm1, %v219_v23, %v231_v24 }
  0x95   : > { %298 = vmatpush1.msra.mxu0 %v255_v25 }
  0x96   : > { %v203_v26 = vpop.permute.xlu1 %202  ;;  %v193_v27 = vpop.permute.xlu0 %192 }
  0x97   : > { %v196_v30 = vsel %vm194_vm5, %v191_v21, %v193_v27 }
  0x9a   : > { %v189_v28 = vpop.permute.xlu1 %188  ;;  %v205_v29 = vpop.permute.xlu0 %204 }
  0x9b   : > { %v208_v31 = vsel %vm206_vm6, %v203_v26, %v205_v29  ;;  %v254_v32 = vsel %vm245_vm1, %v193_v27, %v205_v29  ;;  %v195_v36 = vsel %vm194_vm5, %v189_v28, %v191_v21 }
  0x9c   : > { %514 = vmatprep.subr.mxu1 %v254_v32  ;;  %v253_v33 = vsel %vm245_vm1, %v196_v30, %v208_v31 }
  0x9d   : > { %299 = vmatprep.subr.mxu0 %v253_v33  ;;  %515 = vmatpush3.msra.mxu1 %v254_v32 }
  0x9e   : > { %v167_v34 = vpop.permute.xlu1 %166  ;;  %v201_v35 = vpop.permute.xlu0 %200 }
  0x9f   : > { %v207_v37 = vsel %vm206_vm6, %v201_v35, %v203_v26 }
  0xa0   : > { %v252_v38 = vsel %vm245_vm1, %v195_v36, %v207_v37 }
  0xa1   : > { %300 = vmatpush1.msra.mxu0 %v252_v38 }
  0xa2   : > { %v179_v39 = vpop.permute.xlu1 %178  ;;  %v169_v40 = vpop.permute.xlu0 %168 }
  0xa3   : > { %v172_v43 = vsel %vm170_vm7, %v167_v34, %v169_v40 }
  0xa6   : > { %v165_v41 = vpop.permute.xlu1 %164  ;;  %v181_v42 = vpop.permute.xlu0 %180 }
  0xa7   : > { %v184_v44 = vsel %vm182_vm8, %v179_v39, %v181_v42  ;;  %v251_v45 = vsel %vm245_vm1, %v169_v40, %v181_v42  ;;  %v171_v49 = vsel %vm170_vm7, %v165_v41, %v167_v34 }
  0xa8   : > { %516 = vmatprep.subr.mxu1 %v251_v45  ;;  %v250_v46 = vsel %vm245_vm1, %v172_v43, %v184_v44 }
  0xa9   : > { %301 = vmatprep.subr.mxu0 %v250_v46  ;;  %517 = vmatpush3.msra.mxu1 %v251_v45 }
  0xaa   : > { %v155_v47 = vpop.permute.xlu1 %154  ;;  %v177_v48 = vpop.permute.xlu0 %176 }
  0xab   : > { %v183_v50 = vsel %vm182_vm8, %v177_v48, %v179_v39 }
  0xac   : > { %v249_v51 = vsel %vm245_vm1, %v171_v49, %v183_v50 }
  0xad   : > { %302 = vmatpush1.msra.mxu0 %v249_v51 }
  0xae   : > { %v153_v52 = vpop.permute.xlu1 %152  ;;  %v157_v53 = vpop.permute.xlu0 %156 }
  0xaf   : > { %v159_v54 = vsel %vm158_vm9, %v153_v52, %v155_v47  ;;  %v160_v55 = vsel %vm158_vm9, %v155_v47, %v157_v53  ;;  %v248_v56 = vsel %vm245_vm1, %v591_v0, %v157_v53 }
  0xb0   : > { %518 = vmatprep.subr.mxu1 %v248_v56  ;;  %v247_v58 = vsel %vm245_vm1, %v599_v2, %v160_v55  ;;  %v246_v59 = vsel %vm245_vm1, %v593_v1, %v159_v54 }
  0xb1   : > { %303 = vmatprep.subr.mxu0 %v247_v58  ;;  %519 = vmatpush3.msra.mxu1 %v248_v56 }
  0xb2   : > { %304 = vmatpush1.msra.mxu0 %v246_v59  ;;  %521 = vmatmul.mubr.msk.f32.vlgmr.msra.gmra.mxu1 %vm260_vm0, %v259_v57 }
  0xb3   : > { %496 = vmatmul.mubr.msk.f32.vlgmr.msra.gmra.mxu0 %vm260_vm0, %v621_v6 }
  0xb4   : > { %343 = vmatprep.mubr.f32.mxu0 %v560_v5 }
  0xb7   : > { %497 = vmatmul.mubr.msk.f32.gmra.mxu0 %vm260_vm0, %v259_v57 }
 0x172   : > { %v522_v60 = vpop.f32.mrf.mxu1 }
 0x173   : > { %v339_v61 = vpop.f32.mrf.mxu0  ;;  %431 = vst.msk [vmem:[%s143_s30 + $0x28] sm:$0xff] %vm427_vm10, %v522_v60 }
 0x174   : > { %425 = vst [vmem:[%s143_s30] sm:$0xff] %v339_v61  ;;  %v416_v62 = vpop.f32.mrf.mxu1 }
 0x175   : > { %v341_v63 = vpop.f32.mrf.mxu0  ;;  %428 = vst.msk [vmem:[%s143_s30 + $0x10] sm:$0xff] %vm427_vm10, %v416_v62 }
 0x176   : > { %426 = vst [vmem:[%s143_s30 + $0x8] sm:$0xff] %v341_v63 }
 0x177   : > { %v345_v0 = vpop.f32.mrf.mxu0 }
 0x178   : > { %429 = vst [vmem:[%s143_s30 + $0x18] sm:$0xff] %v345_v0 }
 0x179   : > { %v347_v1 = vpop.f32.mrf.mxu0 }
 0x17a   : > { %430 = vst [vmem:[%s143_s30 + $0x20] sm:$0xff] %v347_v1 }
 0x17b PF: > { %s12_s9 = sadd.s32 1, %s551_s9  }
 0x17c   : > { %p9_p4 = scmp.ge.s32.totalorder %s12_s9, 4  }
 0x17e   :  { %11 = sbr.rel (!%p9_p4) target bundleno = 1 (0x1), region = 58 }

// kernel: conv_offset_2d_multi.3
= control target key start
LH: loop header
LB: loop body
LE: loop exit
PB: predicated region body
PF: predicated region fallthrough
CT: control target
= control target key end

     0   :  { %s1856_s12 = smov 0   ;;  %s1858_s13 = smov 0   ;;  %s2226_s0 = inlined_call_operand.vmem [shape: f32[8,16,16], index: 0, kind: input, shape index: {}]   ;;  %s2227_s1 = inlined_call_operand.vmem [shape: f32[16,256], index: 1, kind: input, shape index: {}]   ;;  %s2228_s2 = inlined_call_operand.vmem [shape: f32[16,256], index: 2, kind: input, shape index: {}]   ;;  %s2229_s3 = inlined_call_operand.vmem [shape: f32[16,256], index: 3, kind: output, shape index: {}]  }
   0x1   :  { %s1860_s14 = smov 0  }
   0x2 LB: > { %s25_s15 = sadd.s32 1, %s1828_s13  ;;  %p1750_p0 = scmp.ge.s32.totalorder %s1832_s14, 1  ;;  %s1832_s14 = sphi %s1860_s14, %s13_s14   ;;  %s1828_s13 = sphi %s1858_s13, %s2231_s13   ;;  %s1824_s12 = sphi %s1856_s12, %s2230_s12  }
   0x3   : > { %p27_p1 = scmp.ge.s32.totalorder %s25_s15, 2  ;;  %p175_p2 = scmp.lt.s32.totalorder %s1832_s14, 3 }
   0x5   : > { %s2233_s15 = smov (%p27_p1, %s25_s15), 0  ;;  %p176_p3 = pnand %p1750_p0, %p175_p2 }
   0x6   : > { %p217_p4 = scmp.lt.s32.totalorder (!%p176_p3), %s1824_s12, 1 }
   0x7   : > { %179 = sbr.rel (%p176_p3) target bundleno = 284 (0x11c), region = 32 }
   0xc   : > { %v250_v0 = vlaneseq  ;;  %v1834_v1 = vmov 1966171168   ;;  %v1835_v3 = vmov 0.0   ;;  %s2235_s12 = smov (!%p217_p4, %s1824_s12), 1  ;;  %vm531_vm0 = vcmask 130048  }
   0xd   : > { %v260_v2 = vunpack.c.l.s4 %v1834_v1  ;;  %602 = vmatprep.mubr.f32.mxu0 %v1835_v3  ;;  %685 = vmatprep.mubr.f32.mxu1 %v1835_v3  ;;  %s1876_s16 = sshll.u32 %s2235_s12, 4  ;;  %v515_v1 = vld [vmem:[%s2226_s0] sm:$0xff]  ;;  %vm1616_vm1 = vcmask 1041409   ;;  %vm1618_vm2 = vcmask 1042434   ;;  %vm1620_vm3 = vcmask 1043459  }
   0xe   : > { %v251_v4 = vshrl.u32 %v250_v0, 7  ;;  %s234_s19 = scalar_lea.vmem %s2228_s2, %s1876_s16  ;;  %s1888_s22 = scalar_lea.vmem %s2227_s1, %s1876_s16  ;;  %vm1622_vm4 = vcmask 1044484   ;;  %vm1624_vm5 = vcmask 1045509   ;;  %vm1626_vm6 = vcmask 1046534  }
   0xf   : > { %v261_v5 = vunpack.c.0.s8 %v260_v2  ;;  %v1804_v8 = vld [vmem:[%s234_s19] ss:$8 sps:$4 sm:$0xff]   ;;  %v1806_v9 = vld [vmem:[%s234_s19 + $0x4] ss:$8 sps:$4 sm:$0xff]   ;;  %vm1628_vm7 = vcmask 1047559   ;;  %s244_s7 = scalar_lea.vmem %s2229_s3, %s1876_s16 }
  0x10   : > { %v252_v7 = vadd.s32 8, %v251_v4  ;;  %v1891_v11 = vsub.s32 0, %v251_v4  ;;  %v1893_v12 = vsub.s32 1, %v251_v4  ;;  %v1896_v14 = vcvt.s32.f32 %v251_v4 }
  0x11   : > { %v1882_v6 = vsub.s32 %v261_v5, %v251_v4 }
  0x12   : > { %v1898_v15 = vcvt.s32.f32 %v252_v7 }
  0x13   : > { %v265_v10 = vrot.slane %v1804_v8, %v1882_v6  ;;  %v272_v13 = vrot.slane %v1806_v9, %v1882_v6 }
  0x15   : > { %v281_v16 = vrot.slane %v265_v10, %v1882_v6  ;;  %v273_v17 = vcombine.high %v265_v10, %v265_v10  ;;  %v288_v18 = vrot.slane %v272_v13, %v1882_v6  ;;  %v274_v19 = vcombine.high %v272_v13, %v272_v13 }
  0x17   : > { %v314_v20 = vrot.slane %v281_v16, %v1893_v12  ;;  %v310_v21 = vrot.slane %v281_v16, %v1891_v11  ;;  %v295_v22 = vrot.slane %v273_v17, %v1882_v6  ;;  %v303_v23 = vcombine.high %v281_v16, %v281_v16  ;;  %v517_v16 = vld [vmem:[%s2226_s0 + $0x10] sm:$0xff] }
  0x18   : > { %v1906_v24 = vrot.slane %v288_v18, %v1893_v12  ;;  %v1909_v25 = vrot.slane %v288_v18, %v1891_v11  ;;  %v1912_v26 = vrot.slane %v274_v19, %v1882_v6  ;;  %v1914_v27 = vcombine.high %v288_v18, %v288_v18 }
  0x19   : > { %v390_v28 = vsub.f32 %v1898_v15, %v314_v20  ;;  %v389_v29 = vsub.f32 %v1898_v15, %v310_v21  ;;  %v388_v30 = vsub.f32 %v1896_v14, %v314_v20  ;;  %v322_v31 = vrot.slane %v295_v22, %v1893_v12 }
  0x1a   : > { %v387_v32 = vsub.f32 %v1896_v14, %v310_v21  ;;  %v318_v33 = vrot.slane %v295_v22, %v1891_v11  ;;  %v330_v34 = vrot.slane %v303_v23, %v1893_v12  ;;  %v326_v35 = vrot.slane %v303_v23, %v1891_v11 }
  0x1b   : > { %v422_v36 = vand.u32 2147483647, %v390_v28  ;;  %v421_v37 = vand.u32 2147483647, %v389_v29  ;;  %v420_v38 = vand.u32 2147483647, %v388_v30  ;;  %v394_v39 = vsub.f32 %v1898_v15, %v322_v31 }
  0x1c   : > { %v419_v40 = vand.u32 2147483647, %v387_v32  ;;  %v393_v41 = vsub.f32 %v1898_v15, %v318_v33  ;;  %v392_v42 = vsub.f32 %v1896_v14, %v322_v31  ;;  %v391_v43 = vsub.f32 %v1896_v14, %v318_v33  ;;  %v516_v28 = vld [vmem:[%s2226_s0 + $0x8] sm:$0xff] }
  0x1d   : > { %v454_v44 = vsub.f32 1.0, %v422_v36  ;;  %v453_v45 = vsub.f32 1.0, %v421_v37  ;;  %v452_v46 = vsub.f32 1.0, %v420_v38  ;;  %v426_v47 = vand.u32 2147483647, %v394_v39  ;;  %v518_v36 = vld [vmem:[%s2226_s0 + $0x18] sm:$0xff] }
  0x1e   : > { %v451_v48 = vsub.f32 1.0, %v419_v40  ;;  %v425_v49 = vand.u32 2147483647, %v393_v41  ;;  %v424_v50 = vand.u32 2147483647, %v392_v42  ;;  %v398_v51 = vsub.f32 %v1898_v15, %v330_v34 }
  0x1f   : > { %v486_v52 = vmax.f32 %v454_v44, 0.0  ;;  %v485_v53 = vmax.f32 %v453_v45, 0.0  ;;  %v484_v54 = vmax.f32 %v452_v46, 0.0  ;;  %v458_v55 = vsub.f32 1.0, %v426_v47 }
  0x20   : > { %v483_v56 = vmax.f32 %v451_v48, 0.0  ;;  %v457_v57 = vsub.f32 1.0, %v425_v49  ;;  %v456_v58 = vsub.f32 1.0, %v424_v50  ;;  %v423_v59 = vand.u32 2147483647, %v391_v43 }
  0x21   : > { %566 = vmatprep.subr.mxu0 %v486_v52  ;;  %v490_v60 = vmax.f32 %v458_v55, 0.0  ;;  %v430_v61 = vand.u32 2147483647, %v398_v51  ;;  %v397_v62 = vsub.f32 %v1898_v15, %v326_v35  ;;  %v305_v63 = vcombine.high %v295_v22, %v295_v22  ;;  %v519_v52 = vld [vmem:[%s2226_s0 + $0x20] sm:$0xff] }
  0x22   : > { %567 = vmatpush1.msra.mxu0 %v485_v53  ;;  %v489_v0 = vmax.f32 %v457_v57, 0.0  ;;  %v488_v2 = vmax.f32 %v456_v58, 0.0  ;;  %v455_v4 = vsub.f32 1.0, %v423_v59  ;;  %v396_v5 = vsub.f32 %v1896_v14, %v330_v34 }
  0x23   : > { %568 = vmatprep.subr.mxu0 %v484_v54  ;;  %649 = vmatprep.subr.mxu1 %v490_v60  ;;  %v462_v7 = vsub.f32 1.0, %v430_v61  ;;  %v429_v8 = vand.u32 2147483647, %v397_v62  ;;  %v338_v9 = vrot.slane %v305_v63, %v1893_v12  ;;  %v334_v10 = vrot.slane %v305_v63, %v1891_v11  ;;  %v521_v63 = vld [vmem:[%s2226_s0 + $0x30] sm:$0xff] }
  0x24   : > { %569 = vmatpush1.msra.mxu0 %v483_v56  ;;  %650 = vmatpush1.msra.mxu1 %v489_v0  ;;  %v487_v13 = vmax.f32 %v455_v4, 0.0  ;;  %v428_v17 = vand.u32 2147483647, %v396_v5  ;;  %v395_v18 = vsub.f32 %v1896_v14, %v326_v35  ;;  %v406_v19 = vsub.f32 %v1898_v15, %v1906_v24 }
  0x25   : > { %1757 = vmatmul.mubr.msk.f32.vlgmr.msra.gmra.mxu0 %vm531_vm0, %v515_v1  ;;  %651 = vmatprep.subr.mxu1 %v488_v2  ;;  %v494_v20 = vmax.f32 %v462_v7, 0.0  ;;  %v461_v21 = vsub.f32 1.0, %v429_v8  ;;  %v402_v22 = vsub.f32 %v1898_v15, %v338_v9  ;;  %v401_v23 = vsub.f32 %v1898_v15, %v334_v10 }
  0x26   : > { %652 = vmatpush1.msra.mxu1 %v487_v13  ;;  %608 = vmatprep.mubr.f32.mxu0 %v1835_v3  ;;  %v460_v29 = vsub.f32 1.0, %v428_v17  ;;  %v427_v30 = vand.u32 2147483647, %v395_v18  ;;  %v400_v31 = vsub.f32 %v1896_v14, %v338_v9  ;;  %v399_v32 = vsub.f32 %v1896_v14, %v334_v10 }
  0x27   : > { %732 = vmatprep.subr.mxu0 %v494_v20  ;;  %1759 = vmatmul.mubr.msk.f32.vlgmr.msra.gmra.mxu1 %vm531_vm0, %v517_v16  ;;  %v493_v33 = vmax.f32 %v461_v21, 0.0  ;;  %v434_v34 = vand.u32 2147483647, %v402_v22  ;;  %v433_v35 = vand.u32 2147483647, %v401_v23  ;;  %v405_v37 = vsub.f32 %v1898_v15, %v1909_v25 }
  0x28   : > { %691 = vmatprep.mubr.f32.mxu1 %v1835_v3  ;;  %v492_v38 = vmax.f32 %v460_v29, 0.0  ;;  %v459_v39 = vsub.f32 1.0, %v427_v30  ;;  %v432_v40 = vand.u32 2147483647, %v400_v31  ;;  %v431_v41 = vand.u32 2147483647, %v399_v32 }
  0x29   : > { %733 = vmatpush1.msra.mxu0 %v493_v33  ;;  %v466_v42 = vsub.f32 1.0, %v434_v34  ;;  %v465_v43 = vsub.f32 1.0, %v433_v35  ;;  %v438_v44 = vand.u32 2147483647, %v406_v19  ;;  %v437_v45 = vand.u32 2147483647, %v405_v37 }
  0x2a   : > { %1758 = vmatmul.mubr.msk.f32.gmra.mxu0 %vm531_vm0, %v516_v28  ;;  %734 = vmatprep.subr.mxu0 %v492_v38  ;;  %v491_v46 = vmax.f32 %v459_v39, 0.0  ;;  %v464_v47 = vsub.f32 1.0, %v432_v40  ;;  %v463_v48 = vsub.f32 1.0, %v431_v41  ;;  %v354_v49 = vrot.slane %v1912_v26, %v1893_v12  ;;  %v523_v34 = vld [vmem:[%s2226_s0 + $0x40] sm:$0xff]  ;;  %v525_v41 = vld [vmem:[%s2226_s0 + $0x50] sm:$0xff] }
  0x2b   : > { %v498_v50 = vmax.f32 %v466_v42, 0.0  ;;  %v497_v51 = vmax.f32 %v465_v43, 0.0  ;;  %1760 = vmatmul.mubr.msk.f32.gmra.mxu1 %vm531_vm0, %v518_v36  ;;  %768 = vmatprep.mubr.f32.mxu0 %v1835_v3  ;;  %v470_v53 = vsub.f32 1.0, %v438_v44  ;;  %v469_v54 = vsub.f32 1.0, %v437_v45 }
  0x2c   : > { %735 = vmatpush1.msra.mxu0 %v491_v46  ;;  %v496_v55 = vmax.f32 %v464_v47, 0.0  ;;  %v495_v56 = vmax.f32 %v463_v48, 0.0  ;;  %851 = vmatprep.mubr.f32.mxu1 %v1835_v3  ;;  %v410_v57 = vsub.f32 %v1898_v15, %v354_v49  ;;  %v350_v58 = vrot.slane %v1912_v26, %v1891_v11 }
  0x2d   : > { %815 = vmatprep.subr.mxu1 %v498_v50  ;;  %v502_v59 = vmax.f32 %v470_v53, 0.0  ;;  %v501_v60 = vmax.f32 %v469_v54, 0.0  ;;  %v404_v61 = vsub.f32 %v1896_v14, %v1906_v24  ;;  %v403_v62 = vsub.f32 %v1896_v14, %v1909_v25  ;;  %v520_v24 = vld [vmem:[%s2226_s0 + $0x28] sm:$0xff] }
  0x2e   : > { %816 = vmatpush1.msra.mxu1 %v497_v51  ;;  %1761 = vmatmul.mubr.msk.f32.vlgmr.msra.gmra.mxu0 %vm531_vm0, %v519_v52  ;;  %v442_v0 = vand.u32 2147483647, %v410_v57  ;;  %v409_v1 = vsub.f32 %v1898_v15, %v350_v58  ;;  %v408_v2 = vsub.f32 %v1896_v14, %v354_v49  ;;  %v407_v4 = vsub.f32 %v1896_v14, %v350_v58  ;;  %v524_v52 = vld [vmem:[%s2226_s0 + $0x48] sm:$0xff]  ;;  %v526_v58 = vld [vmem:[%s2226_s0 + $0x58] sm:$0xff] }
  0x2f   : > { %817 = vmatprep.subr.mxu1 %v496_v55  ;;  %898 = vmatprep.subr.mxu0 %v502_v59  ;;  %v436_v25 = vand.u32 2147483647, %v404_v61  ;;  %v435_v5 = vand.u32 2147483647, %v403_v62  ;;  %v362_v7 = vrot.slane %v1914_v27, %v1893_v12  ;;  %v358_v8 = vrot.slane %v1914_v27, %v1891_v11  ;;  %v522_v27 = vld [vmem:[%s2226_s0 + $0x38] sm:$0xff] }
  0x30   : > { %818 = vmatpush1.msra.mxu1 %v495_v56  ;;  %899 = vmatpush1.msra.mxu0 %v501_v60  ;;  %v474_v9 = vsub.f32 1.0, %v442_v0  ;;  %v441_v10 = vand.u32 2147483647, %v409_v1  ;;  %v440_v13 = vand.u32 2147483647, %v408_v2  ;;  %v306_v16 = vcombine.high %v1912_v26, %v1912_v26 }
  0x31   : > { %1763 = vmatmul.mubr.msk.f32.vlgmr.msra.gmra.mxu1 %vm531_vm0, %v521_v63  ;;  %774 = vmatprep.mubr.f32.mxu0 %v1835_v3  ;;  %v468_v17 = vsub.f32 1.0, %v436_v25  ;;  %v467_v18 = vsub.f32 1.0, %v435_v5  ;;  %v439_v19 = vand.u32 2147483647, %v407_v4  ;;  %v414_v20 = vsub.f32 %v1898_v15, %v362_v7  ;;  %v527_v4 = vld [vmem:[%s2226_s0 + $0x60] sm:$0xff] }
  0x32   : > { %v506_v21 = vmax.f32 %v474_v9, 0.0  ;;  %v473_v22 = vsub.f32 1.0, %v441_v10  ;;  %1762 = vmatmul.mubr.msk.f32.gmra.mxu0 %vm531_vm0, %v520_v24  ;;  %857 = vmatprep.mubr.f32.mxu1 %v1835_v3  ;;  %v472_v26 = vsub.f32 1.0, %v440_v13  ;;  %v413_v23 = vsub.f32 %v1898_v15, %v358_v8  ;;  %v530_v9 = vld [vmem:[%s2226_s0 + $0x78] sm:$0xff]  ;;  %v1807_v10 = vld [vmem:[%s1888_s22] ss:$8 sps:$4 sm:$0xff]  }
  0x33   : > { %v500_v28 = vmax.f32 %v468_v17, 0.0  ;;  %v499_v29 = vmax.f32 %v467_v18, 0.0  ;;  %934 = vmatprep.mubr.f32.mxu0 %v1835_v3  ;;  %v471_v30 = vsub.f32 1.0, %v439_v19  ;;  %v446_v31 = vand.u32 2147483647, %v414_v20 }
  0x34   : > { %981 = vmatprep.subr.mxu1 %v506_v21  ;;  %v505_v32 = vmax.f32 %v473_v22, 0.0  ;;  %v504_v33 = vmax.f32 %v472_v26, 0.0  ;;  %v445_v35 = vand.u32 2147483647, %v413_v23  ;;  %v370_v36 = vrot.slane %v306_v16, %v1893_v12 }
  0x35   : > { %900 = vmatprep.subr.mxu0 %v500_v28  ;;  %1764 = vmatmul.mubr.msk.f32.gmra.mxu1 %vm531_vm0, %v522_v27  ;;  %v503_v37 = vmax.f32 %v471_v30, 0.0  ;;  %v478_v38 = vsub.f32 1.0, %v446_v31  ;;  %v366_v39 = vrot.slane %v306_v16, %v1891_v11  ;;  %v412_v40 = vsub.f32 %v1896_v14, %v362_v7  ;;  %v529_v7 = vld [vmem:[%s2226_s0 + $0x70] sm:$0xff]  ;;  %v1809_v28 = vld [vmem:[%s1888_s22 + $0x4] ss:$8 sps:$4 sm:$0xff]  }
  0x36   : > { %982 = vmatpush1.msra.mxu1 %v505_v32  ;;  %901 = vmatpush1.msra.mxu0 %v499_v29  ;;  %v477_v42 = vsub.f32 1.0, %v445_v35  ;;  %v418_v43 = vsub.f32 %v1898_v15, %v370_v36  ;;  %v411_v44 = vsub.f32 %v1896_v14, %v358_v8  ;;  %v416_v45 = vsub.f32 %v1896_v14, %v370_v36  ;;  %v528_v8 = vld [vmem:[%s2226_s0 + $0x68] sm:$0xff] }
  0x37   : > { %983 = vmatprep.subr.mxu1 %v504_v33  ;;  %1765 = vmatmul.mubr.msk.f32.vlgmr.msra.gmra.mxu0 %vm531_vm0, %v523_v34  ;;  %v510_v46 = vmax.f32 %v478_v38, 0.0  ;;  %v417_v47 = vsub.f32 %v1898_v15, %v366_v39  ;;  %v444_v48 = vand.u32 2147483647, %v412_v40  ;;  %v415_v49 = vsub.f32 %v1896_v14, %v366_v39 }
  0x38   : > { %984 = vmatpush1.msra.mxu1 %v503_v37  ;;  %1017 = vmatprep.mubr.f32.mxu1 %v1835_v3  ;;  %v509_v50 = vmax.f32 %v477_v42, 0.0  ;;  %v450_v51 = vand.u32 2147483647, %v418_v43  ;;  %v443_v53 = vand.u32 2147483647, %v411_v44  ;;  %v1206_v13 = vrot.slane %v1807_v10, %v1882_v6 }
  0x39   : > { %1064 = vmatprep.subr.mxu0 %v510_v46  ;;  %1767 = vmatmul.mubr.msk.f32.vlgmr.msra.gmra.mxu1 %vm531_vm0, %v525_v41  ;;  %v449_v54 = vand.u32 2147483647, %v417_v47  ;;  %v476_v55 = vsub.f32 1.0, %v444_v48  ;;  %v448_v56 = vand.u32 2147483647, %v416_v45  ;;  %v1213_v39 = vrot.slane %v1809_v28, %v1882_v6 }
  0x3a   : > { %1065 = vmatpush1.msra.mxu0 %v509_v50  ;;  %v482_v57 = vsub.f32 1.0, %v450_v51  ;;  %940 = vmatprep.mubr.f32.mxu0 %v1835_v3  ;;  %v475_v59 = vsub.f32 1.0, %v443_v53  ;;  %v447_v60 = vand.u32 2147483647, %v415_v49  ;;  %v1214_v16 = vcombine.high %v1206_v13, %v1206_v13 }
  0x3b   : > { %v481_v61 = vsub.f32 1.0, %v449_v54  ;;  %1766 = vmatmul.mubr.msk.f32.gmra.mxu0 %vm531_vm0, %v524_v52  ;;  %1023 = vmatprep.mubr.f32.mxu1 %v1835_v3  ;;  %v508_v62 = vmax.f32 %v476_v55, 0.0  ;;  %v480_v63 = vsub.f32 1.0, %v448_v56  ;;  %v1222_v17 = vrot.slane %v1206_v13, %v1882_v6 }
  0x3c   : > { %v514_v0 = vmax.f32 %v482_v57, 0.0  ;;  %v507_v1 = vmax.f32 %v475_v59, 0.0  ;;  %1100 = vmatprep.mubr.f32.mxu0 %v1835_v3  ;;  %v479_v2 = vsub.f32 1.0, %v447_v60  ;;  %v1236_v18 = vrot.slane %v1214_v16, %v1882_v6 }
  0x3d   : > { %v513_v24 = vmax.f32 %v481_v61, 0.0  ;;  %1066 = vmatprep.subr.mxu0 %v508_v62  ;;  %1768 = vmatmul.mubr.msk.f32.gmra.mxu1 %vm531_vm0, %v526_v58  ;;  %v512_v25 = vmax.f32 %v480_v63, 0.0  ;;  %v1251_v19 = vrot.slane %v1222_v17, %v1891_v11  ;;  %v1255_v20 = vrot.slane %v1222_v17, %v1893_v12 }
  0x3e   : > { %1147 = vmatprep.subr.mxu1 %v514_v0  ;;  %1067 = vmatpush1.msra.mxu0 %v507_v1  ;;  %v511_v5 = vmax.f32 %v479_v2, 0.0  ;;  %v1244_v21 = vcombine.high %v1222_v17, %v1222_v17  ;;  %v1263_v27 = vrot.slane %v1236_v18, %v1893_v12  ;;  %v1246_v36 = vcombine.high %v1236_v18, %v1236_v18 }
  0x3f   : > { %1148 = vmatpush1.msra.mxu1 %v513_v24  ;;  %1769 = vmatmul.mubr.msk.f32.vlgmr.msra.gmra.mxu0 %vm531_vm0, %v527_v4  ;;  %v1328_v22 = vsub.f32 %v1896_v14, %v1251_v19  ;;  %v1329_v26 = vsub.f32 %v1896_v14, %v1255_v20  ;;  %v1330_v29 = vsub.f32 %v1898_v15, %v1251_v19 }
  0x40   : > { %1149 = vmatprep.subr.mxu1 %v512_v25  ;;  %1183 = vmatprep.mubr.f32.mxu1 %v1835_v3  ;;  %v1267_v30 = vrot.slane %v1244_v21, %v1891_v11  ;;  %v1333_v32 = vsub.f32 %v1896_v14, %v1263_v27  ;;  %v1271_v33 = vrot.slane %v1244_v21, %v1893_v12 }
  0x41   : > { %1150 = vmatpush1.msra.mxu1 %v511_v5  ;;  %1106 = vmatprep.mubr.f32.mxu0 %v1835_v3  ;;  %v1360_v31 = vand.u32 2147483647, %v1328_v22  ;;  %v1361_v34 = vand.u32 2147483647, %v1329_v26  ;;  %v1331_v35 = vsub.f32 %v1898_v15, %v1255_v20  ;;  %v1362_v40 = vand.u32 2147483647, %v1330_v29 }
  0x42   : > { %1771 = vmatmul.mubr.msk.f32.vlgmr.msra.gmra.mxu1 %vm531_vm0, %v529_v7  ;;  %v1335_v41 = vsub.f32 %v1898_v15, %v1263_v27  ;;  %v1336_v42 = vsub.f32 %v1896_v14, %v1267_v30  ;;  %v1365_v44 = vand.u32 2147483647, %v1333_v32  ;;  %v1337_v45 = vsub.f32 %v1896_v14, %v1271_v33 }
  0x43   : > { %1770 = vmatmul.mubr.msk.f32.gmra.mxu0 %vm531_vm0, %v528_v8  ;;  %1189 = vmatprep.mubr.f32.mxu1 %v1835_v3  ;;  %v1259_v3 = vrot.slane %v1236_v18, %v1891_v11  ;;  %v1392_v43 = vsub.f32 1.0, %v1360_v31  ;;  %v1393_v46 = vsub.f32 1.0, %v1361_v34  ;;  %v1363_v47 = vand.u32 2147483647, %v1331_v35 }
  0x44   : > { %v1275_v48 = vrot.slane %v1246_v36, %v1891_v11  ;;  %v1338_v51 = vsub.f32 %v1898_v15, %v1267_v30  ;;  %v1215_v52 = vcombine.high %v1213_v39, %v1213_v39  ;;  %v1394_v53 = vsub.f32 1.0, %v1362_v40 }
  0x45   : > { %v1332_v23 = vsub.f32 %v1896_v14, %v1259_v3  ;;  %v1334_v38 = vsub.f32 %v1898_v15, %v1259_v3  ;;  %v1367_v54 = vand.u32 2147483647, %v1335_v41  ;;  %v1368_v55 = vand.u32 2147483647, %v1336_v42 }
  0x46   : > { %1772 = vmatmul.mubr.msk.f32.gmra.mxu1 %vm531_vm0, %v530_v9  ;;  %v1279_v56 = vrot.slane %v1246_v36, %v1893_v12  ;;  %v2073_v57 = vmax.f32 %v1392_v43, 0.0  ;;  %v1397_v58 = vsub.f32 1.0, %v1365_v44  ;;  %v1369_v59 = vand.u32 2147483647, %v1337_v45 }
  0x47   : > { %v1364_v37 = vand.u32 2147483647, %v1332_v23  ;;  %v1366_v50 = vand.u32 2147483647, %v1334_v38  ;;  %v2075_v60 = vmax.f32 %v1393_v46, 0.0  ;;  %v1395_v61 = vsub.f32 1.0, %v1363_v47 }
  0x48   : > { %v1340_v62 = vsub.f32 %v1896_v14, %v1275_v48  ;;  %v1229_v63 = vrot.slane %v1213_v39, %v1882_v6  ;;  %v1370_v2 = vand.u32 2147483647, %v1338_v51  ;;  %v1243_v4 = vrot.slane %v1215_v52, %v1882_v6 }
  0x49   : > { %v1396_v49 = vsub.f32 1.0, %v1364_v37  ;;  %v1398_v1 = vsub.f32 1.0, %v1366_v50  ;;  %v2082_v24 = vmax.f32 %v1394_v53, 0.0  ;;  %v1399_v25 = vsub.f32 1.0, %v1367_v54 }
  0x4a   : > { %v1400_v5 = vsub.f32 1.0, %v1368_v55  ;;  %v1341_v7 = vsub.f32 %v1896_v14, %v1279_v56  ;;  %v2085_v8 = vmax.f32 %v1397_v58, 0.0  ;;  %v1401_v9 = vsub.f32 1.0, %v1369_v59 }
  0x4b   : > { %v2079_v0 = vmax.f32 %v1396_v49, 0.0  ;;  %v1339_v10 = vsub.f32 %v1898_v15, %v1271_v33  ;;  %v1342_v13 = vsub.f32 %v1898_v15, %v1275_v48  ;;  %v2089_v16 = vmax.f32 %v1395_v61, 0.0 }
  0x4c   : > { %v1372_v17 = vand.u32 2147483647, %v1340_v62  ;;  %v1283_v18 = vrot.slane %v1229_v63, %v1891_v11  ;;  %v1287_v6 = vrot.slane %v1229_v63, %v1893_v12  ;;  %v2093_v19 = vmax.f32 %v1398_v1, 0.0 }
  0x4d   : > { %v1402_v20 = vsub.f32 1.0, %v1370_v2  ;;  %v1291_v3 = vrot.slane %v1243_v4, %v1891_v11  ;;  %v1295_v21 = vrot.slane %v1243_v4, %v1893_v12  ;;  %v2097_v22 = vmax.f32 %v1399_v25, 0.0 }
  0x4e   : > { %v2099_v27 = vmax.f32 %v1400_v5, 0.0  ;;  %v1373_v26 = vand.u32 2147483647, %v1341_v7  ;;  %v1245_v23 = vcombine.high %v1229_v63, %v1229_v63  ;;  %v2101_v28 = vmax.f32 %v1401_v9, 0.0 }
  0x4f   : > { %v1371_v29 = vand.u32 2147483647, %v1339_v10  ;;  %v1374_v30 = vand.u32 2147483647, %v1342_v13  ;;  %v1343_v31 = vsub.f32 %v1898_v15, %v1279_v56  ;;  %v1404_v32 = vsub.f32 1.0, %v1372_v17 }
  0x50   : > { %v1344_v33 = vsub.f32 %v1896_v14, %v1283_v18  ;;  %v1345_v34 = vsub.f32 %v1896_v14, %v1287_v6  ;;  %v1346_v35 = vsub.f32 %v1898_v15, %v1283_v18  ;;  %v2107_v36 = vmax.f32 %v1402_v20, 0.0 }
  0x51   : > { %v1348_v37 = vsub.f32 %v1896_v14, %v1291_v3  ;;  %v1349_v38 = vsub.f32 %v1896_v14, %v1295_v21  ;;  %v1347_v39 = vsub.f32 %v1898_v15, %v1287_v6  ;;  %v1405_v40 = vsub.f32 1.0, %v1373_v26 }
  0x52   : > { %v1350_v41 = vsub.f32 %v1898_v15, %v1291_v3  ;;  %v1351_v42 = vsub.f32 %v1898_v15, %v1295_v21  ;;  %v1299_v43 = vrot.slane %v1245_v23, %v1891_v11  ;;  %v1403_v44 = vsub.f32 1.0, %v1371_v29 }
  0x53   : > { %v1406_v45 = vsub.f32 1.0, %v1374_v30  ;;  %v1375_v46 = vand.u32 2147483647, %v1343_v31  ;;  %v1303_v47 = vrot.slane %v1245_v23, %v1893_v12  ;;  %v1376_v48 = vand.u32 2147483647, %v1344_v33 }
  0x54   : > { %v1377_v49 = vand.u32 2147483647, %v1345_v34  ;;  %v1378_v50 = vand.u32 2147483647, %v1346_v35  ;;  %v1380_v51 = vand.u32 2147483647, %v1348_v37  ;;  %v1352_v58 = vsub.f32 %v1896_v14, %v1299_v43 }
  0x55   : > { %v1381_v52 = vand.u32 2147483647, %v1349_v38  ;;  %v1379_v53 = vand.u32 2147483647, %v1347_v39  ;;  %v2116_v54 = vmax.f32 %v1404_v32, 0.0  ;;  %v2119_v59 = vmax.f32 %v1405_v40, 0.0 }
  0x56   : > { %v1382_v55 = vand.u32 2147483647, %v1350_v41  ;;  %v1383_v56 = vand.u32 2147483647, %v1351_v42  ;;  %v1407_v61 = vsub.f32 1.0, %v1375_v46  ;;  %v1353_v62 = vsub.f32 %v1896_v14, %v1303_v47 }
  0x57   : > { %v1247_v63 = vcombine.high %v1243_v4, %v1243_v4  ;;  %v2122_v1 = vmax.f32 %v1403_v44, 0.0  ;;  %v1408_v2 = vsub.f32 1.0, %v1376_v48  ;;  %v1410_v25 = vsub.f32 1.0, %v1378_v50 }
  0x58   : > { %v1354_v5 = vsub.f32 %v1898_v15, %v1299_v43  ;;  %v1409_v9 = vsub.f32 1.0, %v1377_v49  ;;  %v1412_v10 = vsub.f32 1.0, %v1380_v51  ;;  %v1413_v13 = vsub.f32 1.0, %v1381_v52 }
  0x59   : > { %v1411_v17 = vsub.f32 1.0, %v1379_v53  ;;  %v1414_v18 = vsub.f32 1.0, %v1382_v55  ;;  %v1415_v6 = vsub.f32 1.0, %v1383_v56  ;;  %v1384_v20 = vand.u32 2147483647, %v1352_v58 }
  0x5a   : > { %v1355_v3 = vsub.f32 %v1898_v15, %v1303_v47  ;;  %v2126_v23 = vmax.f32 %v1406_v45, 0.0  ;;  %v2128_v4 = vmax.f32 %v1407_v61, 0.0  ;;  %v1385_v29 = vand.u32 2147483647, %v1353_v62 }
  0x5b   : > { %v1307_v30 = vrot.slane %v1247_v63, %v1891_v11  ;;  %v2131_v31 = vmax.f32 %v1408_v2, 0.0  ;;  %v2133_v32 = vmax.f32 %v1410_v25, 0.0  ;;  %v1386_v33 = vand.u32 2147483647, %v1354_v5 }
  0x5c   : > { %v1311_v34 = vrot.slane %v1247_v63, %v1893_v12  ;;  %v2136_v37 = vmax.f32 %v1409_v9, 0.0  ;;  %v2138_v38 = vmax.f32 %v1412_v10, 0.0  ;;  %v2140_v39 = vmax.f32 %v1413_v13, 0.0 }
  0x5d   : > { %v2142_v40 = vmax.f32 %v1411_v17, 0.0  ;;  %v2144_v42 = vmax.f32 %v1414_v18, 0.0  ;;  %v2146_v11 = vmax.f32 %v1415_v6, 0.0  ;;  %v1416_v43 = vsub.f32 1.0, %v1384_v20 }
  0x5e   : > { %v2148_v44 = vand.u32 2147483647, %v1355_v3  ;;  %v1417_v47 = vsub.f32 1.0, %v1385_v29  ;;  %v1356_v48 = vsub.f32 %v1896_v14, %v1307_v30  ;;  %v1418_v52 = vsub.f32 1.0, %v1386_v33 }
  0x5f   : > { %v1357_v53 = vsub.f32 %v1896_v14, %v1311_v34  ;;  %v1359_v2 = vsub.f32 %v1898_v15, %v1311_v34  ;;  %v2162_v5 = vmax.f32 %v1416_v43, 0.0 }
  0x60   : > { %v1419_v14 = vsub.f32 1.0, %v2148_v44  ;;  %v2165_v9 = vmax.f32 %v1417_v47, 0.0  ;;  %v1388_v10 = vand.u32 2147483647, %v1356_v48  ;;  %v2167_v18 = vmax.f32 %v1418_v52, 0.0 }
  0xe5   : > { %v604_v7 = vpop.f32.mrf.mxu0 }
  0xe6   : > { %v1456_v45 = vmul.f32 %v2073_v57, %v604_v7 }
  0xe7   : > { %v606_v21 = vpop.f32.mrf.mxu0  ;;  %v687_v26 = vpop.f32.mrf.mxu1 }
  0xe8   : > { %v1460_v49 = vmul.f32 %v2079_v0, %v687_v26  ;;  %v1457_v55 = vmul.f32 %v2075_v60, %v606_v21  ;;  %v2171_v21 = vand.u32 2147483647, %v1359_v2 }
  0xe9   : > { %v689_v35 = vpop.f32.mrf.mxu1 }
  0xea   : > { %v610_v41 = vpop.f32.mrf.mxu0  ;;  %v1461_v61 = vmul.f32 %v2085_v8, %v689_v35 }
  0xeb   : > { %v1458_v12 = vmul.f32 %v2082_v24, %v610_v41  ;;  %v693_v46 = vpop.f32.mrf.mxu1  ;;  %v1358_v24 = vsub.f32 %v1898_v15, %v1307_v30 }
  0xec   : > { %v612_v50 = vpop.f32.mrf.mxu0  ;;  %v1462_v51 = vmul.f32 %v2093_v19, %v693_v46 }
  0xed   : > { %v1488_v56 = vadd.f32 %v1458_v12, %v1456_v45  ;;  %v1459_v58 = vmul.f32 %v2089_v16, %v612_v50  ;;  %v695_v57 = vpop.f32.mrf.mxu1  ;;  %v2169_v3 = vand.u32 2147483647, %v1358_v24  ;;  %v1420_v45 = vsub.f32 1.0, %v1388_v10 }
  0xee   : > { %v1502_v62 = vadd.f32 %v1462_v51, %v1460_v49  ;;  %v1463_v63 = vmul.f32 %v2097_v22, %v695_v57  ;;  %v770_v0 = vpop.f32.mrf.mxu0  ;;  %v1389_v22 = vand.u32 2147483647, %v1357_v53 }
  0xef   : > { %v1489_v19 = vrot.slane %v1488_v56, 4  ;;  %v1495_v25 = vadd.f32 %v1459_v58, %v1457_v55  ;;  %v1464_v30 = vmul.f32 %v2099_v27, %v770_v0 }
  0xf0   : > { %v1503_v60 = vrot.slane %v1502_v62, 4  ;;  %v1509_v7 = vadd.f32 %v1463_v63, %v1461_v61  ;;  %v772_v16 = vpop.f32.mrf.mxu0  ;;  %v1421_v58 = vsub.f32 1.0, %v1389_v22 }
  0xf1   : > { %v1490_v13 = vadd.f32 %v1489_v19, %v1488_v56  ;;  %v1496_v8 = vrot.slane %v1495_v25, 4  ;;  %v853_v17 = vpop.f32.mrf.mxu1  ;;  %v1465_v43 = vmul.f32 %v2101_v28, %v772_v16 }
  0xf2   : > { %v1504_v6 = vadd.f32 %v1503_v60, %v1502_v62  ;;  %v1510_v15 = vrot.slane %v1509_v7, 4  ;;  %v776_v20 = vpop.f32.mrf.mxu0  ;;  %v1468_v52 = vmul.f32 %v2116_v54, %v853_v17  ;;  %v2181_v60 = vmax.f32 %v1419_v14, 0.0 }
  0xf3   : > { %v1491_v26 = vrot.slane %v1490_v13, 2  ;;  %v1497_v29 = vadd.f32 %v1496_v8, %v1495_v25  ;;  %v1466_v33 = vmul.f32 %v2107_v36, %v776_v20  ;;  %v855_v34 = vpop.f32.mrf.mxu1  ;;  %v2184_v8 = vmax.f32 %v1420_v45, 0.0 }
  0xf4   : > { %v1505_v35 = vrot.slane %v1504_v6, 2  ;;  %v1511_v41 = vadd.f32 %v1510_v15, %v1509_v7  ;;  %v778_v44 = vpop.f32.mrf.mxu0  ;;  %v1469_v53 = vmul.f32 %v2119_v59, %v855_v34  ;;  %v1422_v59 = vsub.f32 1.0, %v2169_v3 }
  0xf5   : > { %v1492_v12 = vadd.f32 %v1491_v26, %v1490_v13  ;;  %v1498_v46 = vrot.slane %v1497_v29, 2  ;;  %v1516_v47 = vadd.f32 %v1466_v33, %v1464_v30  ;;  %v1467_v48 = vmul.f32 %v2122_v1, %v778_v44  ;;  %v859_v49 = vpop.f32.mrf.mxu1 }
  0xf6   : > { %v1506_v50 = vadd.f32 %v1505_v35, %v1504_v6  ;;  %v1512_v51 = vrot.slane %v1511_v41, 2  ;;  %v1470_v27 = vmul.f32 %v2126_v23, %v859_v49  ;;  %v2187_v15 = vmax.f32 %v1421_v58, 0.0 }
  0xf7   : > { %v1517_v36 = vrot.slane %v1516_v47, 4  ;;  %v1523_v55 = vadd.f32 %v1467_v48, %v1465_v43  ;;  %v861_v56 = vpop.f32.mrf.mxu1  ;;  %v936_v28 = vpop.f32.mrf.mxu0  ;;  %v1493_v57 = vrot.slane %v1492_v12, 1  ;;  %v1499_v24 = vadd.f32 %v1498_v46, %v1497_v29 }
  0xf8   : > { %v1530_v61 = vadd.f32 %v1470_v27, %v1468_v52  ;;  %v1471_v62 = vmul.f32 %v2128_v4, %v861_v56  ;;  %v1507_v1 = vrot.slane %v1506_v50, 1  ;;  %v1513_v63 = vadd.f32 %v1512_v51, %v1511_v41 }
  0xf9   : > { %v1518_v0 = vadd.f32 %v1517_v36, %v1516_v47  ;;  %v1524_v2 = vrot.slane %v1523_v55, 4  ;;  %v938_v19 = vpop.f32.mrf.mxu0  ;;  %v1019_v54 = vpop.f32.mrf.mxu1  ;;  %v1423_v4 = vsub.f32 1.0, %v2171_v21  ;;  %v1500_v17 = vrot.slane %v1499_v24, 1 }
  0xfa   : > { %v1531_v23 = vrot.slane %v1530_v61, 4  ;;  %v1537_v25 = vadd.f32 %v1471_v62, %v1469_v53  ;;  %v1494_v20 = vadd.f32 %v1493_v57, %v1492_v12  ;;  %v1508_v26 = vadd.f32 %v1507_v1, %v1506_v50 }
  0xfb   : > { %v1519_v7 = vrot.slane %v1518_v0, 2  ;;  %v1525_v16 = vadd.f32 %v1524_v2, %v1523_v55  ;;  %v942_v10 = vpop.f32.mrf.mxu0  ;;  %v1021_v13 = vpop.f32.mrf.mxu1  ;;  %v1514_v29 = vrot.slane %v1513_v63, 1  ;;  %v1472_v35 = vmul.f32 %v2131_v31, %v936_v28 }
  0xfc   : > { %v1532_v22 = vadd.f32 %v1531_v23, %v1530_v61  ;;  %v1538_v6 = vrot.slane %v1537_v25, 4  ;;  %v1474_v41 = vmul.f32 %v2133_v32, %v942_v10  ;;  %v1473_v21 = vmul.f32 %v2136_v37, %v938_v19 }
  0xfd   : > { %v1526_v14 = vrot.slane %v1525_v16, 2  ;;  %v944_v30 = vpop.f32.mrf.mxu0  ;;  %v1025_v33 = vpop.f32.mrf.mxu1  ;;  %v1520_v3 = vadd.f32 %v1519_v7, %v1518_v0  ;;  %v1501_v12 = vadd.f32 %v1500_v17, %v1499_v24  ;;  %v1476_v48 = vmul.f32 %v2138_v38, %v1019_v54 }
  0xfe   : > { %v1539_v34 = vadd.f32 %v1538_v6, %v1537_v25  ;;  %v1533_v44 = vrot.slane %v1532_v22, 2  ;;  %v1475_v45 = vmul.f32 %v2142_v40, %v944_v30  ;;  %v1544_v49 = vadd.f32 %v1474_v41, %v1472_v35 }
  0xff   : > { %v1527_v43 = vadd.f32 %v1526_v14, %v1525_v16  ;;  %v1027_v46 = vpop.f32.mrf.mxu1  ;;  %v1102_v47 = vpop.f32.mrf.mxu0  ;;  %v1478_v50 = vmul.f32 %v2144_v42, %v1025_v33  ;;  %v1515_v51 = vadd.f32 %v1514_v29, %v1513_v63  ;;  %v1477_v52 = vmul.f32 %v2140_v39, %v1021_v13 }
 0x100   : > { %v1551_v31 = vadd.f32 %v1475_v45, %v1473_v21  ;;  %v1479_v32 = vmul.f32 %v2146_v11, %v1027_v46  ;;  %v1521_v36 = vrot.slane %v1520_v3, 1  ;;  %v1540_v37 = vrot.slane %v1539_v34, 2 }
 0x101   : > { %v1104_v27 = vpop.f32.mrf.mxu0  ;;  %v1545_v53 = vrot.slane %v1544_v49, 4  ;;  %v1558_v40 = vadd.f32 %v1478_v50, %v1476_v48  ;;  %v1528_v56 = vrot.slane %v1527_v43, 1  ;;  %v1534_v28 = vadd.f32 %v1533_v44, %v1532_v22 }
 0x102   : > { %v1185_v55 = vpop.f32.mrf.mxu1  ;;  %v1552_v58 = vrot.slane %v1551_v31, 4  ;;  %v1565_v38 = vadd.f32 %v1479_v32, %v1477_v52  ;;  %v1454_v62 = vmax.f32 %v1422_v59, 0.0  ;;  %v1455_v39 = vmax.f32 %v1423_v4, 0.0 }
 0x103   : > { %v1108_v57 = vpop.f32.mrf.mxu0  ;;  %v1546_v24 = vadd.f32 %v1545_v53, %v1544_v49  ;;  %v1559_v42 = vrot.slane %v1558_v40, 4  ;;  %v1617_v1 = vsel %vm1616_vm1, %v1508_v26, %v1494_v20  ;;  %v1630_v11 = vsel %vm1616_vm1, %v1515_v51, %v1501_v12 }
 0x104   : > { %v1187_v61 = vpop.f32.mrf.mxu1  ;;  %v1553_v63 = vadd.f32 %v1552_v58, %v1551_v31  ;;  %v1566_v0 = vrot.slane %v1565_v38, 4  ;;  %v1522_v2 = vadd.f32 %v1521_v36, %v1520_v3  ;;  %v1541_v19 = vadd.f32 %v1540_v37, %v1539_v34 }
 0x105   : > { %v1547_v54 = vrot.slane %v1546_v24, 2  ;;  %v1560_v23 = vadd.f32 %v1559_v42, %v1558_v40  ;;  %v1110_v25 = vpop.f32.mrf.mxu0  ;;  %v1529_v16 = vadd.f32 %v1528_v56, %v1527_v43  ;;  %v1535_v10 = vrot.slane %v1534_v28, 1 }
 0x106   : > { %v1191_v7 = vpop.f32.mrf.mxu1  ;;  %v1554_v13 = vrot.slane %v1553_v63, 2  ;;  %v1567_v17 = vadd.f32 %v1566_v0, %v1565_v38  ;;  %v1480_v4 = vmul.f32 %v2162_v5, %v1102_v47  ;;  %v1482_v6 = vmul.f32 %v2167_v18, %v1108_v57 }
 0x107   : > { %v1548_v22 = vadd.f32 %v1547_v54, %v1546_v24  ;;  %v1561_v59 = vrot.slane %v1560_v23, 2  ;;  %v1481_v14 = vmul.f32 %v2165_v9, %v1104_v27  ;;  %v1483_v30 = vmul.f32 %v2181_v60, %v1110_v25 }
 0x108   : > { %v1193_v20 = vpop.f32.mrf.mxu1  ;;  %v1555_v26 = vadd.f32 %v1554_v13, %v1553_v63  ;;  %v1568_v29 = vrot.slane %v1567_v17, 2  ;;  %v1542_v33 = vrot.slane %v1541_v19, 1  ;;  %v1484_v3 = vmul.f32 %v2184_v8, %v1185_v55 }
 0x109   : > { %v1572_v34 = vadd.f32 %v1482_v6, %v1480_v4  ;;  %v1486_v35 = vmul.f32 %v1454_v62, %v1191_v7  ;;  %v1562_v41 = vadd.f32 %v1561_v59, %v1560_v23  ;;  %v1485_v43 = vmul.f32 %v2187_v15, %v1187_v61 }
 0x10a   : > { %v1579_v44 = vadd.f32 %v1483_v30, %v1481_v14  ;;  %v1487_v21 = vmul.f32 %v1455_v39, %v1193_v20  ;;  %v1549_v5 = vrot.slane %v1548_v22, 1  ;;  %v1569_v45 = vadd.f32 %v1568_v29, %v1567_v17 }
 0x10b   : > { %v1573_v18 = vrot.slane %v1572_v34, 4  ;;  %v1586_v46 = vadd.f32 %v1486_v35, %v1484_v3  ;;  %v1619_v47 = vsel %vm1618_vm2, %v1522_v2, %v1617_v1  ;;  %v1556_v12 = vrot.slane %v1555_v26, 1 }
 0x10c   : > { %v1580_v9 = vrot.slane %v1579_v44, 4  ;;  %v1593_v48 = vadd.f32 %v1487_v21, %v1485_v43  ;;  %v1631_v60 = vsel %vm1618_vm2, %v1529_v16, %v1630_v11  ;;  %v1536_v49 = vadd.f32 %v1535_v10, %v1534_v28 }
 0x10d   : > { %v1574_v8 = vadd.f32 %v1573_v18, %v1572_v34  ;;  %v1587_v50 = vrot.slane %v1586_v46, 4  ;;  %v1543_v51 = vadd.f32 %v1542_v33, %v1541_v19  ;;  %v1563_v52 = vrot.slane %v1562_v41, 1 }
 0x10e   : > { %v1581_v31 = vadd.f32 %v1580_v9, %v1579_v44  ;;  %v1594_v15 = vrot.slane %v1593_v48, 4  ;;  %v1550_v32 = vadd.f32 %v1549_v5, %v1548_v22  ;;  %v1570_v27 = vrot.slane %v1569_v45, 1 }
 0x10f   : > { %v1575_v36 = vrot.slane %v1574_v8, 2  ;;  %v1588_v37 = vadd.f32 %v1587_v50, %v1586_v46  ;;  %v1557_v53 = vadd.f32 %v1556_v12, %v1555_v26  ;;  %v1621_v56 = vsel %vm1620_vm3, %v1536_v49, %v1619_v47 }
 0x110   : > { %v1582_v40 = vrot.slane %v1581_v31, 2  ;;  %v1595_v55 = vadd.f32 %v1594_v15, %v1593_v48  ;;  %v1632_v28 = vsel %vm1620_vm3, %v1543_v51, %v1631_v60  ;;  %v1564_v57 = vadd.f32 %v1563_v52, %v1562_v41 }
 0x111   : > { %v1576_v58 = vadd.f32 %v1575_v36, %v1574_v8  ;;  %v1589_v38 = vrot.slane %v1588_v37, 2  ;;  %v1623_v61 = vsel %vm1622_vm4, %v1550_v32, %v1621_v56  ;;  %v1571_v62 = vadd.f32 %v1570_v27, %v1569_v45 }
 0x112   : > { %v1583_v24 = vadd.f32 %v1582_v40, %v1581_v31  ;;  %v1596_v42 = vrot.slane %v1595_v55, 2  ;;  %v1633_v11 = vsel %vm1622_vm4, %v1557_v53, %v1632_v28  ;;  %v1625_v54 = vsel %vm1624_vm5, %v1564_v57, %v1623_v61 }
 0x113   : > { %v1577_v39 = vrot.slane %v1576_v58, 1  ;;  %v1590_v1 = vadd.f32 %v1589_v38, %v1588_v37  ;;  %v1634_v7 = vsel %vm1624_vm5, %v1571_v62, %v1633_v11 }
 0x114   : > { %v1584_v63 = vrot.slane %v1583_v24, 1  ;;  %v1597_v0 = vadd.f32 %v1596_v42, %v1595_v55 }
 0x115   : > { %v1578_v2 = vadd.f32 %v1577_v39, %v1576_v58  ;;  %v1591_v19 = vrot.slane %v1590_v1, 1 }
 0x116   : > { %v1585_v23 = vadd.f32 %v1584_v63, %v1583_v24  ;;  %v1598_v25 = vrot.slane %v1597_v0, 1 }
 0x117   : > { %v1627_v16 = vsel %vm1626_vm6, %v1578_v2, %v1625_v54  ;;  %v1592_v10 = vadd.f32 %v1591_v19, %v1590_v1 }
 0x118   : > { %v1635_v13 = vsel %vm1626_vm6, %v1585_v23, %v1634_v7  ;;  %v1599_v17 = vadd.f32 %v1598_v25, %v1597_v0 }
 0x119   : > { %v1629_v22 = vsel %vm1628_vm7, %v1592_v10, %v1627_v16 }
 0x11a   : > { %1639 = vst [vmem:[%s244_s7] sm:$0xff] %v1629_v22  ;;  %v1636_v59 = vsel %vm1628_vm7, %v1599_v17, %v1635_v13 }
 0x11b   : > { %1640 = vst [vmem:[%s244_s7 + $0x8] sm:$0xff] %v1636_v59 }
 0x11c PF: > { %s13_s14 = sadd.s32 1, %s1832_s14   ;;  %s2230_s12 = smov %s1828_s13 }
 0x11d   : > { %p10_p5 = scmp.ge.s32.totalorder %s13_s14, 4   ;;  %s2231_s13 = smov %s2233_s15 }
 0x11f   :  { %12 = sbr.rel (!%p10_p5) target bundleno = 2 (0x2), region = 65 }

</bundles_post_ra>
